<compile_context>
chip_gen: v5e
topology: v5e:2x2
jax: 0.10.0
libtpu: 0.0.40
codegen_flags: <defaults>
</compile_context>

<pallas_src>
import jax
import jax.numpy as jnp
from jax.experimental import pallas as pl
from jax.experimental.pallas import tpu as pltpu

LANE = 128        # TPU lane width: pad feature/class dims to this
TM = 256          # aggregation row tile (dst nodes)
TK = 512          # aggregation reduction tile (src nodes)
TM_PROJ = 512     # projection row tile
NTILE = 512       # pad n to a multiple of this (lcm of TM, TK, TM_PROJ)
VMEM_LIMIT = 56 << 20


# ----------------------------------------------------------------------------
# Kernels
# ----------------------------------------------------------------------------
def _project_kernel(x_ref, w_ref, ns_ref, m_ref):
    """m1 = norm_src * (x @ w1), emitted in bf16 for the MXU-heavy aggregation."""
    xw = jnp.dot(x_ref[...], w_ref[...], preferred_element_type=jnp.float32)
    m_ref[...] = (xw * ns_ref[...]).astype(m_ref.dtype)


def _agg1_fused_kernel(a_ref, m_ref, nd_ref, ns_ref, b1_ref, w2_ref,
                       m2_ref, acc_ref):
    """Layer-1 aggregation + ReLU, fused with the layer-2 projection.

    acc = sum_k A[i,k] @ M1[k]           (K-accumulated in f32 scratch)
    h   = relu(norm_dst * acc + b1)      (never written to HBM)
    m2  = norm_src * (h @ W2)            (bf16 output, fed to layer-2 agg)
    """
    k = pl.program_id(1)

    @pl.when(k == 0)
    def _():
        acc_ref[...] = jnp.zeros_like(acc_ref)

    a = a_ref[...].astype(jnp.bfloat16)          # int8 (0/1) -> bf16, exact
    start = pl.multiple_of(k * TK, TK)
    acc_ref[...] += jnp.dot(a, m_ref[pl.ds(start, TK), :],
                            preferred_element_type=jnp.float32)

    @pl.when(k == pl.num_programs(1) - 1)
    def _():
        h = jnp.maximum(acc_ref[...] * nd_ref[...] + b1_ref[...], 0.0)
        m2 = jnp.dot(h, w2_ref[...], preferred_element_type=jnp.float32)
        m2_ref[...] = (m2 * ns_ref[...]).astype(m2_ref.dtype)


def _agg2_kernel(a_ref, m_ref, nd_ref, b_ref, o_ref):
    """out = norm_dst * sum_k A[i,k] @ M2[k] + b2, accumulated in the f32 output."""
    k = pl.program_id(1)

    @pl.when(k == 0)
    def _():
        o_ref[...] = jnp.zeros_like(o_ref)

    a = a_ref[...].astype(jnp.bfloat16)
    start = pl.multiple_of(k * TK, TK)
    o_ref[...] += jnp.dot(a, m_ref[pl.ds(start, TK), :],
                          preferred_element_type=jnp.float32)

    @pl.when(k == pl.num_programs(1) - 1)
    def _():
        o_ref[...] = o_ref[...] * nd_ref[...] + b_ref[...]


# ----------------------------------------------------------------------------
# pallas_call wrappers
# ----------------------------------------------------------------------------
def _project(x, w, norm_src):
    n_pad, f_pad = x.shape
    h_pad = w.shape[1]
    return pl.pallas_call(
        _project_kernel,
        out_shape=jax.ShapeDtypeStruct((n_pad, h_pad), jnp.bfloat16),
        grid=(n_pad // TM_PROJ,),
        in_specs=[
            pl.BlockSpec((TM_PROJ, f_pad), lambda i: (i, 0)),
            pl.BlockSpec((f_pad, h_pad), lambda i: (0, 0)),    # resident W1
            pl.BlockSpec((TM_PROJ, 1), lambda i: (i, 0)),
        ],
        out_specs=pl.BlockSpec((TM_PROJ, h_pad), lambda i: (i, 0)),
        compiler_params=pltpu.CompilerParams(
            dimension_semantics=("parallel",),
            vmem_limit_bytes=VMEM_LIMIT),
    )(x, w, norm_src)


def _aggregate_fused(a_i8, m1, norm_dst, norm_src, b1, w2):
    n_pad = a_i8.shape[0]
    h_pad = m1.shape[1]
    c_pad = w2.shape[1]
    return pl.pallas_call(
        _agg1_fused_kernel,
        out_shape=jax.ShapeDtypeStruct((n_pad, c_pad), jnp.bfloat16),
        grid=(n_pad // TM, n_pad // TK),
        in_specs=[
            pl.BlockSpec((TM, TK), lambda i, k: (i, k)),        # A slab (int8)
            pl.BlockSpec((n_pad, h_pad), lambda i, k: (0, 0)),  # resident M1
            pl.BlockSpec((TM, 1), lambda i, k: (i, 0)),         # dst norm
            pl.BlockSpec((TM, 1), lambda i, k: (i, 0)),         # src norm (for m2)
            pl.BlockSpec((1, h_pad), lambda i, k: (0, 0)),      # resident b1
            pl.BlockSpec((h_pad, c_pad), lambda i, k: (0, 0)),  # resident W2
        ],
        out_specs=pl.BlockSpec((TM, c_pad), lambda i, k: (i, 0)),
        scratch_shapes=[pltpu.VMEM((TM, h_pad), jnp.float32)],
        compiler_params=pltpu.CompilerParams(
            dimension_semantics=("parallel", "arbitrary"),
            vmem_limit_bytes=VMEM_LIMIT),
    )(a_i8, m1, norm_dst, norm_src, b1, w2)


def _aggregate_out(a_i8, m2, norm_dst, b2):
    n_pad = a_i8.shape[0]
    c_pad = m2.shape[1]
    return pl.pallas_call(
        _agg2_kernel,
        out_shape=jax.ShapeDtypeStruct((n_pad, c_pad), jnp.float32),
        grid=(n_pad // TM, n_pad // TK),
        in_specs=[
            pl.BlockSpec((TM, TK), lambda i, k: (i, k)),        # A slab (int8)
            pl.BlockSpec((n_pad, c_pad), lambda i, k: (0, 0)),  # resident M2
            pl.BlockSpec((TM, 1), lambda i, k: (i, 0)),         # dst norm
            pl.BlockSpec((1, c_pad), lambda i, k: (0, 0)),      # resident b2
        ],
        out_specs=pl.BlockSpec((TM, c_pad), lambda i, k: (i, 0)),
        compiler_params=pltpu.CompilerParams(
            dimension_semantics=("parallel", "arbitrary"),
            vmem_limit_bytes=VMEM_LIMIT),
    )(a_i8, m2, norm_dst, b2)


# ----------------------------------------------------------------------------
# GCN forward
# ----------------------------------------------------------------------------
def gcn_forward(adj, x, w1, b1, w2, b2):
    n = adj.shape[0]
    fin = x.shape[1]
    h_feats = w1.shape[1]
    num_classes = w2.shape[1]

    n_pad = ((n + NTILE - 1) // NTILE) * NTILE
    f_pad = ((fin + LANE - 1) // LANE) * LANE
    h_pad = ((h_feats + LANE - 1) // LANE) * LANE
    c_pad = ((num_classes + LANE - 1) // LANE) * LANE

    # Degree norms in f32 in the wrapper (DGL norm='both', clamp >= 1).
    norm_dst = jax.lax.rsqrt(jnp.maximum(adj.sum(axis=1, keepdims=True), 1.0))  # in-deg(dst)
    norm_src = jax.lax.rsqrt(jnp.maximum(adj.sum(axis=0), 1.0))[:, None]        # out-deg(src)

    # Pad to tile multiples / lane-dense feature dims.
    # A stored as int8 (entries are 0/1 -> exact); upcast to bf16 in-kernel.
    adj_i8 = jnp.pad(adj, ((0, n_pad - n), (0, n_pad - n))).astype(jnp.int8)
    x_p = jnp.pad(x, ((0, n_pad - n), (0, f_pad - fin))).astype(jnp.bfloat16)
    nd_p = jnp.pad(norm_dst, ((0, n_pad - n), (0, 0)))
    ns_p = jnp.pad(norm_src, ((0, n_pad - n), (0, 0)))
    w1_p = jnp.pad(w1, ((0, f_pad - fin), (0, h_pad - h_feats))).astype(jnp.bfloat16)
    b1_p = jnp.pad(b1.reshape(1, -1).astype(jnp.float32), ((0, 0), (0, h_pad - h_feats)))
    w2_p = jnp.pad(w2.astype(jnp.float32),
                   ((0, h_pad - h_feats), (0, c_pad - num_classes)))
    b2_p = jnp.pad(b2.reshape(1, -1).astype(jnp.float32), ((0, 0), (0, c_pad - num_classes)))

    # Layer 1 project: m1 = norm_src * (X @ W1)                        (bf16)
    m1 = _project(x_p, w1_p, ns_p)
    # Layer 1 aggregate + ReLU + fused layer-2 project:
    #   m2 = norm_src * (relu(norm_dst * (A @ m1) + b1) @ W2)          (bf16)
    m2 = _aggregate_fused(adj_i8, m1, nd_p, ns_p, b1_p, w2_p)
    # Layer 2 aggregate: out = norm_dst * (A @ m2) + b2                (f32)
    out = _aggregate_out(adj_i8, m2, nd_p, b2_p)

    return out[:n, :num_classes]


def _glorot(key, shape):
    fan_in, fan_out = shape
    limit = (6.0 / (fan_in + fan_out)) ** 0.5
    return jax.random.uniform(key, shape, jnp.float32, -limit, limit)


if __name__ == "__main__":
    # Small synthetic "cora-like" node-classification setup.
    N = 256
    in_feats = 32
    h_feats = 16
    num_classes = 8

    key = jax.random.PRNGKey(0)
    k_adj, k_x, k_w1, k_w2 = jax.random.split(key, 4)

    # Random sparse-ish directed adjacency (A[dst, src] = 1), plus self loops.
    adj = (jax.random.uniform(k_adj, (N, N)) < 0.05).astype(jnp.float32)
    adj = jnp.maximum(adj, jnp.eye(N, dtype=jnp.float32))

    x = jax.random.normal(k_x, (N, in_feats), dtype=jnp.float32)

    # GraphConv-style init: xavier-uniform weights, zero biases.
    w1 = _glorot(k_w1, (in_feats, h_feats))
    b1 = jnp.zeros((h_feats,), dtype=jnp.float32)
    w2 = _glorot(k_w2, (h_feats, num_classes))
    b2 = jnp.zeros((num_classes,), dtype=jnp.float32)

    out = gcn_forward(adj, x, w1, b1, w2, b2)
    out = jax.block_until_ready(out)

    # Pure-JAX f32 reference to sanity-check kernel semantics.
    norm_dst = jax.lax.rsqrt(jnp.maximum(adj.sum(axis=1, keepdims=True), 1.0))
    norm_src = jax.lax.rsqrt(jnp.maximum(adj.sum(axis=0, keepdims=True), 1.0))
    ahat = norm_dst * adj * norm_src
    h_ref = jnp.maximum(ahat @ (x @ w1) + b1[None, :], 0.0)
    out_ref = ahat @ (h_ref @ w2) + b2[None, :]

    assert out.shape == (N, num_classes)
    # bf16 feature operands with f32 accumulation (A is int8 0/1 -> exact): loose-ish tol.
    assert jnp.allclose(out, out_ref, atol=2e-2, rtol=2e-2), \
        float(jnp.max(jnp.abs(out - out_ref)))

    print("KERNEL_OK")
</pallas_src>

<mosaic_0001>
module attributes {stable_mosaic.version = 11 : i64} {
  func.func @_project_kernel(%arg0: i32, %arg1: memref<512x128xbf16, #tpu.memory_space<vmem>>, %arg2: memref<128x128xbf16, #tpu.memory_space<vmem>>, %arg3: memref<512x1xf32, #tpu.memory_space<vmem>>, %arg4: memref<512x128xbf16, #tpu.memory_space<vmem>>) attributes {dimension_semantics = [#tpu.dimension_semantics<parallel>], iteration_bounds = array<i64: 1>, scalar_prefetch = 0 : i64, scratch_operands = 0 : i64, tpu.core_type = #tpu.core_type<tc>, window_params = [{transform_indices = @transform_0, window_bounds = array<i64: 512, 128>}, {pipeline_mode = #tpu.pipeline_mode<synchronous>, transform_indices = @transform_1, window_bounds = array<i64: 128, 128>}, {transform_indices = @transform_2, window_bounds = array<i64: 512, 1>}, {transform_indices = @transform_3, window_bounds = array<i64: 512, 128>}]} {
    %c0 = arith.constant 0 : index
    %c0_0 = arith.constant 0 : index
    %0 = vector.load %arg1[%c0, %c0_0] : memref<512x128xbf16, #tpu.memory_space<vmem>>, vector<512x128xbf16>
    %c0_1 = arith.constant 0 : index
    %c0_2 = arith.constant 0 : index
    %1 = vector.load %arg2[%c0_1, %c0_2] : memref<128x128xbf16, #tpu.memory_space<vmem>>, vector<128x128xbf16>
    %cst = arith.constant dense<0.000000e+00> : vector<512x128xf32>
    %2 = tpu.matmul %0, %1, %cst {dimension_numbers = #tpu.dot_dimension_numbers<[1], [0], [0], [1], [0, 0, 1, 1], [], []>} : vector<512x128xbf16>, vector<128x128xbf16>, vector<512x128xf32> -> vector<512x128xf32>
    %c0_3 = arith.constant 0 : index
    %c0_4 = arith.constant 0 : index
    %3 = vector.load %arg3[%c0_3, %c0_4] : memref<512x1xf32, #tpu.memory_space<vmem>>, vector<512x1xf32>
    %4 = vector.broadcast %3 : vector<512x1xf32> to vector<512x128xf32>
    %5 = arith.mulf %2, %4 : vector<512x128xf32>
    %6 = arith.truncf %5 : vector<512x128xf32> to vector<512x128xbf16>
    %c0_5 = arith.constant 0 : index
    %c0_6 = arith.constant 0 : index
    %7 = vector.load %arg4[%c0_5, %c0_6] : memref<512x128xbf16, #tpu.memory_space<vmem>>, vector<512x128xbf16>
    tpu.vector_store %arg4[%c0_5, %c0_6], %6 {strides = array<i32>} : memref<512x128xbf16, #tpu.memory_space<vmem>>, vector<512x128xbf16>,
    return
  }
  func.func @transform_0(%arg0: i32) -> (i32, i32) {
    %c0_i32 = arith.constant 0 : i32
    %c0_i32_0 = arith.constant 0 : i32
    return %arg0, %c0_i32 : i32, i32
  }
  func.func @transform_1(%arg0: i32) -> (i32, i32) {
    %c0_i32 = arith.constant 0 : i32
    %c0_i32_0 = arith.constant 0 : i32
    %c0_i32_1 = arith.constant 0 : i32
    return %c0_i32, %c0_i32_0 : i32, i32
  }
  func.func @transform_2(%arg0: i32) -> (i32, i32) {
    %c0_i32 = arith.constant 0 : i32
    %c0_i32_0 = arith.constant 0 : i32
    return %arg0, %c0_i32 : i32, i32
  }
  func.func @transform_3(%arg0: i32) -> (i32, i32) {
    %c0_i32 = arith.constant 0 : i32
    %c0_i32_0 = arith.constant 0 : i32
    return %arg0, %c0_i32 : i32, i32
  }
}

</mosaic_0001>

<bundles_post_ra>
// kernel: tpu_custom_call.1
= control target key start
LH: loop header
LB: loop body
LE: loop exit
PB: predicated region body
PF: predicated region fallthrough
CT: control target
= control target key end

     0   :  { %v1546_v3 = vmov 0   ;;  %s2011_s0 = inlined_call_operand.vmem [shape: bf16[512,128], index: 0, kind: input, shape index: {}]   ;;  %s2012_s1 = inlined_call_operand.vmem [shape: bf16[128,128], index: 1, kind: input, shape index: {}]   ;;  %s2013_s2 = inlined_call_operand.vmem [shape: f32[512,1], index: 2, kind: input, shape index: {}]   ;;  %s2014_s3 = inlined_call_operand.hbm [shape: bf16[512,128], index: 3, kind: output, shape index: {}]  }
   0x1   :  { %v508_v0 = vld [vmem:[%s2013_s2 + $0x20] sm:$0xff]  ;;  %v506_v1 = vld [vmem:[%s2013_s2 + $0x10] sm:$0xff]  ;;  %1519 = vset.pattern.permute.xlu2 %v1546_v3  ;;  %1518 = vset.pattern.permute.xlu1 %v1546_v3  ;;  %v1297_v4 = vld [vmem:[%s2012_s1 + $0x38] sm:$0xff] }
   0x2   :  { %v504_v2 = vld [vmem:[%s2013_s2] sm:$0xff]  ;;  %1517 = vset.pattern.permute.xlu0 %v1546_v3  ;;  %590 = vperm.xlu2 %1519, %v508_v0   ;;  %v1296_v5 = vld [vmem:[%s2012_s1 + $0x30] sm:$0xff]  ;;  %v509_v6 = vld [vmem:[%s2013_s2 + $0x28] sm:$0xff] }
   0x3   :  { %580 = vperm.xlu1 %1518, %v506_v1   ;;  %570 = vperm.xlu0 %1517, %v504_v2   ;;  %v507_v7 = vld [vmem:[%s2013_s2 + $0x18] sm:$0xff]  ;;  %v505_v8 = vld [vmem:[%s2013_s2 + $0x8] sm:$0xff] }
   0x4   :  { %335 = vmatpush.bf16.msra.mxu0 %v1297_v4  ;;  %1489 = vmatpush.bf16.msra.mxu1 %v1297_v4  ;;  %v1295_v9 = vld [vmem:[%s2012_s1 + $0x28] sm:$0xff] }
   0x5   :  { %1490 = vmatpush.bf16.msra.mxu2 %v1297_v4  ;;  %1491 = vmatpush.bf16.msra.mxu3 %v1297_v4 }
   0x8   :  { %336 = vmatpush.bf16.msra.mxu0 %v1296_v5  ;;  %1492 = vmatpush.bf16.msra.mxu1 %v1296_v5 }
   0x9   :  { %1493 = vmatpush.bf16.msra.mxu2 %v1296_v5  ;;  %1494 = vmatpush.bf16.msra.mxu3 %v1296_v5 }
   0xa   :  { %8 = vsyncpa [#allocation3], 0  ;;  %595 = vperm.xlu2 %1519, %v509_v6   ;;  %v1294_v10 = vld [vmem:[%s2012_s1 + $0x20] sm:$0xff]  ;;  %v511_v12 = vld [vmem:[%s2013_s2 + $0x38] sm:$0xff]  ;;  %s1086_s27 = sshll.u32 %s2014_s3, 4  ;;  %s1548_s28 = smov 64   ;;  %s1087_s27 = int_to_ptr.hbm [resolvable:$true] %s1086_s27 }
   0xb   :  { %585 = vperm.xlu1 %1518, %v507_v7   ;;  %575 = vperm.xlu0 %1517, %v505_v8   ;;  %v512_v11 = vld [vmem:[%s2013_s2 + $0x40] sm:$0xff]  ;;  %v510_v13 = vld [vmem:[%s2013_s2 + $0x30] sm:$0xff]  ;;  %v1293_v14 = vld [vmem:[%s2012_s1 + $0x18] sm:$0xff]  ;;  %s1549_s29 = smov 4  }
   0xc   :  { %337 = vmatpush.bf16.msra.mxu0 %v1295_v9  ;;  %1495 = vmatpush.bf16.msra.mxu1 %v1295_v9  ;;  %v1292_v15 = vld [vmem:[%s2012_s1 + $0x10] sm:$0xff]  ;;  %v515_v16 = vld [vmem:[%s2013_s2 + $0x58] sm:$0xff]  ;;  %v513_v18 = vld [vmem:[%s2013_s2 + $0x48] sm:$0xff] }
   0xd   :  { %1496 = vmatpush.bf16.msra.mxu2 %v1295_v9  ;;  %1497 = vmatpush.bf16.msra.mxu3 %v1295_v9  ;;  %v514_v17 = vld [vmem:[%s2013_s2 + $0x50] sm:$0xff]  ;;  %v1291_v19 = vld [vmem:[%s2012_s1 + $0x8] sm:$0xff]  ;;  %v1290_v20 = vld [vmem:[%s2012_s1] sm:$0xff] }
   0xe   :  { %v518_v21 = vld [vmem:[%s2013_s2 + $0x70] sm:$0xff]  ;;  %v517_v22 = vld [vmem:[%s2013_s2 + $0x68] sm:$0xff]  ;;  %v516_v23 = vld [vmem:[%s2013_s2 + $0x60] sm:$0xff] }
   0xf   :  { %v1258_v24 = vld [vmem:[%s2011_s0] sm:$0xff]  ;;  %v521_v28 = vld [vmem:[%s2013_s2 + $0x88] sm:$0xff]  ;;  %v519_v30 = vld [vmem:[%s2013_s2 + $0x78] sm:$0xff] }
  0x10   :  { %338 = vmatpush.bf16.msra.mxu0 %v1294_v10  ;;  %1498 = vmatpush.bf16.msra.mxu1 %v1294_v10  ;;  %v1266_v25 = vld [vmem:[%s2011_s0 + $0x40] sm:$0xff]  ;;  %v523_v32 = vld [vmem:[%s2013_s2 + $0x98] sm:$0xff]  ;;  %v522_v33 = vld [vmem:[%s2013_s2 + $0x90] sm:$0xff] }
  0x11   :  { %1499 = vmatpush.bf16.msra.mxu2 %v1294_v10  ;;  %1500 = vmatpush.bf16.msra.mxu3 %v1294_v10  ;;  %v1274_v26 = vld [vmem:[%s2011_s0 + $0x80] sm:$0xff]  ;;  %v1259_v34 = vld [vmem:[%s2011_s0 + $0x8] sm:$0xff]  ;;  %v527_v38 = vld [vmem:[%s2013_s2 + $0xb8] sm:$0xff] }
  0x12   :  { %610 = vperm.xlu2 %1519, %v512_v11   ;;  %v1282_v27 = vld [vmem:[%s2011_s0 + $0xc0] sm:$0xff]  ;;  %v1267_v35 = vld [vmem:[%s2011_s0 + $0x48] sm:$0xff]  ;;  %v526_v39 = vld [vmem:[%s2013_s2 + $0xb0] sm:$0xff] }
  0x13   :  { %605 = vperm.xlu1 %1518, %v511_v12   ;;  %600 = vperm.xlu0 %1517, %v510_v13   ;;  %v520_v29 = vld [vmem:[%s2013_s2 + $0x80] sm:$0xff]  ;;  %v1275_v36 = vld [vmem:[%s2011_s0 + $0x88] sm:$0xff]  ;;  %v530_v41 = vld [vmem:[%s2013_s2 + $0xd0] sm:$0xff] }
  0x14   :  { %339 = vmatpush.bf16.msra.mxu0 %v1293_v14  ;;  %1501 = vmatpush.bf16.msra.mxu1 %v1293_v14  ;;  %v524_v31 = vld [vmem:[%s2013_s2 + $0xa0] sm:$0xff]  ;;  %v1283_v37 = vld [vmem:[%s2011_s0 + $0xc8] sm:$0xff]  ;;  %v1260_v44 = vld [vmem:[%s2011_s0 + $0x10] sm:$0xff] }
  0x15   :  { %1502 = vmatpush.bf16.msra.mxu2 %v1293_v14  ;;  %1503 = vmatpush.bf16.msra.mxu3 %v1293_v14  ;;  %v525_v40 = vld [vmem:[%s2013_s2 + $0xa8] sm:$0xff]  ;;  %v528_v43 = vld [vmem:[%s2013_s2 + $0xc0] sm:$0xff]  ;;  %v1268_v45 = vld [vmem:[%s2011_s0 + $0x50] sm:$0xff] }
  0x16   :  { %v529_v42 = vld [vmem:[%s2013_s2 + $0xc8] sm:$0xff]  ;;  %v1276_v46 = vld [vmem:[%s2011_s0 + $0x90] sm:$0xff]  ;;  %v532_v49 = vld [vmem:[%s2013_s2 + $0xe0] sm:$0xff] }
  0x17   :  { %v1284_v47 = vld [vmem:[%s2011_s0 + $0xd0] sm:$0xff]  ;;  %v533_v48 = vld [vmem:[%s2013_s2 + $0xe8] sm:$0xff]  ;;  %v531_v50 = vld [vmem:[%s2013_s2 + $0xd8] sm:$0xff] }
  0x18   :  { %340 = vmatpush.bf16.msra.mxu0 %v1292_v15  ;;  %1504 = vmatpush.bf16.msra.mxu1 %v1292_v15  ;;  %v536_v51 = vld [vmem:[%s2013_s2 + $0x100] sm:$0xff]  ;;  %v535_v52 = vld [vmem:[%s2013_s2 + $0xf8] sm:$0xff]  ;;  %v534_v53 = vld [vmem:[%s2013_s2 + $0xf0] sm:$0xff] }
  0x19   :  { %1505 = vmatpush.bf16.msra.mxu2 %v1292_v15  ;;  %1506 = vmatpush.bf16.msra.mxu3 %v1292_v15  ;;  %v1261_v54 = vld [vmem:[%s2011_s0 + $0x18] sm:$0xff]  ;;  %v538_v59 = vld [vmem:[%s2013_s2 + $0x110] sm:$0xff]  ;;  %v537_v60 = vld [vmem:[%s2013_s2 + $0x108] sm:$0xff] }
  0x1a   :  { %625 = vperm.xlu2 %1519, %v515_v16   ;;  %v1269_v55 = vld [vmem:[%s2011_s0 + $0x58] sm:$0xff]  ;;  %v542_v62 = vld [vmem:[%s2013_s2 + $0x130] sm:$0xff]  ;;  %v541_v63 = vld [vmem:[%s2013_s2 + $0x128] sm:$0xff] }
  0x1b   :  { %620 = vperm.xlu1 %1518, %v514_v17   ;;  %615 = vperm.xlu0 %1517, %v513_v18   ;;  %v1277_v56 = vld [vmem:[%s2011_s0 + $0x98] sm:$0xff]  ;;  %v540_v0 = vld [vmem:[%s2013_s2 + $0x120] sm:$0xff]  ;;  %v545_v6 = vld [vmem:[%s2013_s2 + $0x148] sm:$0xff] }
  0x1c   :  { %341 = vmatpush.bf16.msra.mxu0 %v1291_v19  ;;  %1507 = vmatpush.bf16.msra.mxu1 %v1291_v19  ;;  %v1285_v57 = vld [vmem:[%s2011_s0 + $0xd8] sm:$0xff]  ;;  %v1262_v1 = vld [vmem:[%s2011_s0 + $0x20] sm:$0xff]  ;;  %v546_v12 = vld [vmem:[%s2013_s2 + $0x150] sm:$0xff] }
  0x1d   :  { %1508 = vmatpush.bf16.msra.mxu2 %v1291_v19  ;;  %1509 = vmatpush.bf16.msra.mxu3 %v1291_v19  ;;  %v539_v58 = vld [vmem:[%s2013_s2 + $0x118] sm:$0xff]  ;;  %v1270_v2 = vld [vmem:[%s2011_s0 + $0x60] sm:$0xff]  ;;  %v1263_v13 = vld [vmem:[%s2011_s0 + $0x28] sm:$0xff] }
  0x1e   :  { %v1278_v3 = vld [vmem:[%s2011_s0 + $0xa0] sm:$0xff]  ;;  %v543_v8 = vld [vmem:[%s2013_s2 + $0x138] sm:$0xff]  ;;  %v1271_v14 = vld [vmem:[%s2011_s0 + $0x68] sm:$0xff] }
  0x1f   :  { %v1286_v4 = vld [vmem:[%s2011_s0 + $0xe0] sm:$0xff]  ;;  %v547_v11 = vld [vmem:[%s2013_s2 + $0x158] sm:$0xff]  ;;  %v1279_v15 = vld [vmem:[%s2011_s0 + $0xa8] sm:$0xff] }
  0x20   :  { %342 = vmatpush.bf16.msra.mxu0 %v1290_v20  ;;  %1510 = vmatpush.bf16.msra.mxu1 %v1290_v20  ;;  %v544_v7 = vld [vmem:[%s2013_s2 + $0x140] sm:$0xff]  ;;  %v1287_v16 = vld [vmem:[%s2011_s0 + $0xe8] sm:$0xff] }
  0x21   :  { %1511 = vmatpush.bf16.msra.mxu2 %v1290_v20  ;;  %1512 = vmatpush.bf16.msra.mxu3 %v1290_v20  ;;  %v548_v10 = vld [vmem:[%s2013_s2 + $0x160] sm:$0xff]  ;;  %v551_v20 = vld [vmem:[%s2013_s2 + $0x178] sm:$0xff] }
  0x22   :  { %640 = vperm.xlu2 %1519, %v518_v21   ;;  %v550_v21 = vld [vmem:[%s2013_s2 + $0x170] sm:$0xff] }
  0x23   :  { %635 = vperm.xlu1 %1518, %v517_v22   ;;  %630 = vperm.xlu0 %1517, %v516_v23   ;;  %v549_v22 = vld [vmem:[%s2013_s2 + $0x168] sm:$0xff] }
  0x24   :  { %343 = vmatmul.bf16.vlgmr.msra.gmra.mxu0 %v1258_v24  ;;  %383 = vmatmul.bf16.vlgmr.msra.gmra.mxu1 %v1266_v25 }
  0x25   :  { %423 = vmatmul.bf16.vlgmr.msra.gmra.mxu2 %v1274_v26  ;;  %463 = vmatmul.bf16.vlgmr.msra.gmra.mxu3 %v1282_v27  ;;  %v554_v26 = vld [vmem:[%s2013_s2 + $0x190] sm:$0xff]  ;;  %v553_v27 = vld [vmem:[%s2013_s2 + $0x188] sm:$0xff] }
  0x2a   :  { %655 = vperm.xlu2 %1519, %v521_v28   ;;  %v552_v28 = vld [vmem:[%s2013_s2 + $0x180] sm:$0xff] }
  0x2b   :  { %650 = vperm.xlu1 %1518, %v520_v29   ;;  %645 = vperm.xlu0 %1517, %v519_v30   ;;  %v1264_v29 = vld [vmem:[%s2011_s0 + $0x30] sm:$0xff] }
  0x2c   :  { %v1272_v30 = vld [vmem:[%s2011_s0 + $0x70] sm:$0xff] }
  0x32   :  { %670 = vperm.xlu2 %1519, %v524_v31   ;;  %v1280_v31 = vld [vmem:[%s2011_s0 + $0xb0] sm:$0xff] }
  0x33   :  { %665 = vperm.xlu1 %1518, %v523_v32   ;;  %660 = vperm.xlu0 %1517, %v522_v33   ;;  %v1288_v32 = vld [vmem:[%s2011_s0 + $0xf0] sm:$0xff] }
  0x34   :  { %348 = vmatmul.bf16.gmra.mxu0 %v1259_v34  ;;  %388 = vmatmul.bf16.gmra.mxu1 %v1267_v35 }
  0x35   :  { %428 = vmatmul.bf16.gmra.mxu2 %v1275_v36  ;;  %468 = vmatmul.bf16.gmra.mxu3 %v1283_v37  ;;  %v557_v36 = vld [vmem:[%s2013_s2 + $0x1a8] sm:$0xff]  ;;  %v556_v37 = vld [vmem:[%s2013_s2 + $0x1a0] sm:$0xff] }
  0x3a   :  { %685 = vperm.xlu2 %1519, %v527_v38   ;;  %v555_v38 = vld [vmem:[%s2013_s2 + $0x198] sm:$0xff] }
  0x3b   :  { %680 = vperm.xlu1 %1518, %v526_v39   ;;  %675 = vperm.xlu0 %1517, %v525_v40  }
  0x42   :  { %700 = vperm.xlu2 %1519, %v530_v41  }
  0x43   :  { %695 = vperm.xlu1 %1518, %v529_v42   ;;  %690 = vperm.xlu0 %1517, %v528_v43   ;;  %v560_v42 = vld [vmem:[%s2013_s2 + $0x1c0] sm:$0xff]  ;;  %v559_v43 = vld [vmem:[%s2013_s2 + $0x1b8] sm:$0xff] }
  0x44   :  { %353 = vmatmul.bf16.gmra.mxu0 %v1260_v44  ;;  %393 = vmatmul.bf16.gmra.mxu1 %v1268_v45  ;;  %v558_v44 = vld [vmem:[%s2013_s2 + $0x1b0] sm:$0xff]  ;;  %v1265_v45 = vld [vmem:[%s2011_s0 + $0x38] sm:$0xff] }
  0x45   :  { %433 = vmatmul.bf16.gmra.mxu2 %v1276_v46  ;;  %473 = vmatmul.bf16.gmra.mxu3 %v1284_v47  ;;  %v1273_v46 = vld [vmem:[%s2011_s0 + $0x78] sm:$0xff] }
  0x46   :  { %v1281_v47 = vld [vmem:[%s2011_s0 + $0xb8] sm:$0xff] }
  0x4a   :  { %715 = vperm.xlu2 %1519, %v533_v48   ;;  %v1289_v48 = vld [vmem:[%s2011_s0 + $0xf8] sm:$0xff] }
  0x4b   :  { %710 = vperm.xlu1 %1518, %v532_v49   ;;  %705 = vperm.xlu0 %1517, %v531_v50  }
  0x52   :  { %730 = vperm.xlu2 %1519, %v536_v51  }
  0x53   :  { %725 = vperm.xlu1 %1518, %v535_v52   ;;  %720 = vperm.xlu0 %1517, %v534_v53   ;;  %v563_v52 = vld [vmem:[%s2013_s2 + $0x1d8] sm:$0xff]  ;;  %v562_v53 = vld [vmem:[%s2013_s2 + $0x1d0] sm:$0xff] }
  0x54   :  { %358 = vmatmul.bf16.gmra.mxu0 %v1261_v54  ;;  %398 = vmatmul.bf16.gmra.mxu1 %v1269_v55  ;;  %v561_v54 = vld [vmem:[%s2013_s2 + $0x1c8] sm:$0xff] }
  0x55   :  { %438 = vmatmul.bf16.gmra.mxu2 %v1277_v56  ;;  %478 = vmatmul.bf16.gmra.mxu3 %v1285_v57 }
  0x5a   :  { %745 = vperm.xlu2 %1519, %v539_v58   ;;  %v566_v58 = vld [vmem:[%s2013_s2 + $0x1f0] sm:$0xff] }
  0x5b   :  { %740 = vperm.xlu1 %1518, %v538_v59   ;;  %735 = vperm.xlu0 %1517, %v537_v60   ;;  %v565_v59 = vld [vmem:[%s2013_s2 + $0x1e8] sm:$0xff]  ;;  %v564_v60 = vld [vmem:[%s2013_s2 + $0x1e0] sm:$0xff] }
  0x5c   :  { %v1750_v61 = vpop.permute.xlu2 %590 }
  0x62   :  { %760 = vperm.xlu2 %1519, %v542_v62  }
  0x63   :  { %755 = vperm.xlu1 %1518, %v541_v63   ;;  %750 = vperm.xlu0 %1517, %v540_v0  }
  0x64   :  { %363 = vmatmul.bf16.gmra.mxu0 %v1262_v1  ;;  %403 = vmatmul.bf16.gmra.mxu1 %v1270_v2  ;;  %v1773_v5 = vpop.permute.xlu2 %595 }
  0x65   :  { %443 = vmatmul.bf16.gmra.mxu2 %v1278_v3  ;;  %483 = vmatmul.bf16.gmra.mxu3 %v1286_v4 }
  0x6a   :  { %775 = vperm.xlu2 %1519, %v545_v6   ;;  %v567_v6 = vld [vmem:[%s2013_s2 + $0x1f8] sm:$0xff]  ;;  %s1547_s2 = smov [#allocation2]  }
  0x6b   :  { %770 = vperm.xlu1 %1518, %v544_v7   ;;  %765 = vperm.xlu0 %1517, %v543_v8   ;;  %s1084_s24 = sshll.u32 %s1547_s2, 4  ;;  %s1085_s24 = int_to_ptr.vmem [resolvable:$true] %s1084_s24 }
  0x6c   :  { %v1784_v9 = vpop.permute.xlu2 %610 }
  0x72   :  { %790 = vperm.xlu2 %1519, %v548_v10  }
  0x73   :  { %785 = vperm.xlu1 %1518, %v547_v11   ;;  %780 = vperm.xlu0 %1517, %v546_v12  }
  0x74   :  { %368 = vmatmul.bf16.gmra.mxu0 %v1263_v13  ;;  %408 = vmatmul.bf16.gmra.mxu1 %v1271_v14  ;;  %v1807_v17 = vpop.permute.xlu2 %625 }
  0x75   :  { %448 = vmatmul.bf16.gmra.mxu2 %v1279_v15  ;;  %488 = vmatmul.bf16.gmra.mxu3 %v1287_v16  ;;  %v1809_v18 = vpop.permute.xlu1 %580  ;;  %v1811_v19 = vpop.permute.xlu0 %570 }
  0x7a   :  { %805 = vperm.xlu2 %1519, %v551_v20  }
  0x7b   :  { %800 = vperm.xlu1 %1518, %v550_v21   ;;  %795 = vperm.xlu0 %1517, %v549_v22  }
  0x7c   :  { %v1822_v23 = vpop.permute.xlu2 %640 }
  0x7d   :  { %v1824_v24 = vpop.permute.xlu1 %585  ;;  %v1826_v25 = vpop.permute.xlu0 %575 }
  0x82   :  { %820 = vperm.xlu2 %1519, %v554_v26  }
  0x83   :  { %815 = vperm.xlu1 %1518, %v553_v27   ;;  %810 = vperm.xlu0 %1517, %v552_v28  }
  0x84   :  { %373 = vmatmul.bf16.gmra.mxu0 %v1264_v29  ;;  %413 = vmatmul.bf16.gmra.mxu1 %v1272_v30  ;;  %v656_v33 = vpop.permute.xlu2 %655 }
  0x85   :  { %453 = vmatmul.bf16.gmra.mxu2 %v1280_v31  ;;  %493 = vmatmul.bf16.gmra.mxu3 %v1288_v32  ;;  %v1849_v34 = vpop.permute.xlu1 %605  ;;  %v1851_v35 = vpop.permute.xlu0 %600 }
  0x8a   :  { %835 = vperm.xlu2 %1519, %v557_v36  }
  0x8b   :  { %830 = vperm.xlu1 %1518, %v556_v37   ;;  %825 = vperm.xlu0 %1517, %v555_v38  }
  0x8c   :  { %v1862_v39 = vpop.permute.xlu2 %670 }
  0x8d   :  { %v1864_v40 = vpop.permute.xlu1 %620  ;;  %v1866_v41 = vpop.permute.xlu0 %615 }
  0x92   :  { %850 = vperm.xlu2 %1519, %v560_v42  }
  0x93   :  { %845 = vperm.xlu1 %1518, %v559_v43   ;;  %840 = vperm.xlu0 %1517, %v558_v44  }
  0x94   :  { %378 = vmatmul.bf16.gmra.mxu0 %v1265_v45  ;;  %418 = vmatmul.bf16.gmra.mxu1 %v1273_v46  ;;  %v1889_v49 = vpop.permute.xlu2 %685 }
  0x95   :  { %458 = vmatmul.bf16.gmra.mxu2 %v1281_v47  ;;  %498 = vmatmul.bf16.gmra.mxu3 %v1289_v48  ;;  %v1891_v50 = vpop.permute.xlu1 %635  ;;  %v1893_v51 = vpop.permute.xlu0 %630 }
  0x9a   :  { %865 = vperm.xlu2 %1519, %v563_v52  }
  0x9b   :  { %860 = vperm.xlu1 %1518, %v562_v53   ;;  %855 = vperm.xlu0 %1517, %v561_v54  }
  0x9c   :  { %v1904_v55 = vpop.permute.xlu2 %700 }
  0x9d   :  { %v651_v56 = vpop.permute.xlu1 %650  ;;  %v1906_v57 = vpop.permute.xlu0 %645 }
  0xa1   :  { %v344_v62 = vpop.f32.mrf.mxu0  ;;  %v384_v63 = vpop.f32.mrf.mxu1 }
  0xa2   :  { %880 = vperm.xlu2 %1519, %v566_v58   ;;  %v888_v10 = vmul.f32 %v1811_v19, %v344_v62  ;;  %v904_v11 = vmul.f32 %v651_v56, %v384_v63 }
  0xa3   :  { %875 = vperm.xlu1 %1518, %v565_v59   ;;  %870 = vperm.xlu0 %1517, %v564_v60  }
  0xa4   :  { %v1917_v0 = vpop.permute.xlu2 %715 }
  0xa5   :  { %v666_v1 = vpop.permute.xlu1 %665  ;;  %v661_v2 = vpop.permute.xlu0 %660 }
  0xa8   :  { %v424_v3 = vpop.f32.mrf.mxu2  ;;  %v1919_v4 = vpop.f32.mrf.mxu3 }
  0xa9   :  { %v346_v7 = vpop.f32.mrf.mxu0  ;;  %v386_v8 = vpop.f32.mrf.mxu1 }
  0xaa   :  { %v889_v12 = vmul.f32 %v1826_v25, %v346_v7  ;;  %v905_v13 = vmul.f32 %v656_v33, %v386_v8 }
  0xab   :  { %885 = vperm.xlu0 %1517, %v567_v6  }
  0xac   :  { %v1301_v14 = vpack.c.bf16 %v889_v12, %v888_v10  ;;  %v1341_v15 = vpack.c.bf16 %v905_v13, %v904_v11  ;;  %v731_v16 = vpop.permute.xlu2 %730 }
  0xad   :  { %v1926_v20 = vpop.permute.xlu1 %680  ;;  %v676_v21 = vpop.permute.xlu0 %675  ;;  %v920_v12 = vmul.f32 %v731_v16, %v424_v3 }
  0xae   :  { %1302 = vst [vmem:[#allocation2] sm:$0xff] %v1301_v14  }
  0xaf   :  { %1465 = vst [vmem:[#allocation2 + $0x40] sm:$0xff] %v1341_v15  }
  0xb0   :  { %v426_v22 = vpop.f32.mrf.mxu2  ;;  %v1928_v26 = vpop.f32.mrf.mxu3 }
  0xb1   :  { %v349_v27 = vpop.f32.mrf.mxu0  ;;  %v389_v28 = vpop.f32.mrf.mxu1 }
  0xb2   :  { %v890_v36 = vmul.f32 %v1809_v18, %v349_v27  ;;  %v906_v37 = vmul.f32 %v661_v2, %v389_v28 }
  0xb4   :  { %v746_v25 = vpop.permute.xlu2 %745 }
  0xb5   :  { %v1930_v29 = vpop.permute.xlu1 %695  ;;  %v1932_v19 = vpop.permute.xlu0 %690 }
  0xb8   :  { %v429_v30 = vpop.f32.mrf.mxu2  ;;  %v1934_v31 = vpop.f32.mrf.mxu3 }
  0xb9   :  { %v351_v32 = vpop.f32.mrf.mxu0  ;;  %v391_v33 = vpop.f32.mrf.mxu1 }
  0xba   :  { %v891_v38 = vmul.f32 %v1824_v24, %v351_v32  ;;  %v907_v42 = vmul.f32 %v666_v1, %v391_v33 }
  0xbc   :  { %v1306_v43 = vpack.c.bf16 %v891_v38, %v890_v36  ;;  %v1346_v44 = vpack.c.bf16 %v907_v42, %v906_v37  ;;  %v761_v54 = vpop.permute.xlu2 %760 }
  0xbd   :  { %v1938_v45 = vpop.permute.xlu1 %710  ;;  %v1940_v46 = vpop.permute.xlu0 %705 }
  0xbe   :  { %1458 = vst [vmem:[#allocation2 + $0x8] sm:$0xff] %v1306_v43  }
  0xbf   :  { %1466 = vst [vmem:[#allocation2 + $0x48] sm:$0xff] %v1346_v44  }
  0xc0   :  { %v431_v47 = vpop.f32.mrf.mxu2  ;;  %v1942_v48 = vpop.f32.mrf.mxu3 }
  0xc1   :  { %v354_v52 = vpop.f32.mrf.mxu0  ;;  %v394_v53 = vpop.f32.mrf.mxu1  ;;  %v923_v13 = vmul.f32 %v746_v25, %v431_v47 }
  0xc2   :  { %v892_v62 = vmul.f32 %v1750_v61, %v354_v52  ;;  %v908_v63 = vmul.f32 %v1862_v39, %v394_v53 }
  0xc4   :  { %v1953_v6 = vpop.permute.xlu2 %775 }
  0xc5   :  { %v1944_v56 = vpop.permute.xlu1 %725  ;;  %v1946_v18 = vpop.permute.xlu0 %720 }
  0xc8   :  { %v434_v24 = vpop.f32.mrf.mxu2  ;;  %v1948_v58 = vpop.f32.mrf.mxu3 }
  0xc9   :  { %v356_v59 = vpop.f32.mrf.mxu0  ;;  %v396_v60 = vpop.f32.mrf.mxu1 }
  0xca   :  { %v893_v1 = vmul.f32 %v1773_v5, %v356_v59  ;;  %v909_v2 = vmul.f32 %v676_v21, %v396_v60 }
  0xcc   :  { %v1311_v7 = vpack.c.bf16 %v893_v1, %v892_v62  ;;  %v1351_v8 = vpack.c.bf16 %v909_v2, %v908_v63  ;;  %v1957_v38 = vpop.permute.xlu2 %790 }
  0xcd   :  { %v741_v10 = vpop.permute.xlu1 %740  ;;  %v736_v11 = vpop.permute.xlu0 %735 }
  0xce   :  { %1459 = vst [vmem:[#allocation2 + $0x10] sm:$0xff] %v1311_v7   ;;  %v922_v14 = vmul.f32 %v741_v10, %v429_v30  ;;  %v921_v15 = vmul.f32 %v736_v11, %v426_v22 }
  0xcf   :  { %1467 = vst [vmem:[#allocation2 + $0x50] sm:$0xff] %v1351_v8  }
  0xd0   :  { %v1386_v27 = vpack.c.bf16 %v923_v13, %v922_v14  ;;  %v1381_v28 = vpack.c.bf16 %v921_v15, %v920_v12  ;;  %v436_v61 = vpop.f32.mrf.mxu2  ;;  %v1955_v32 = vpop.f32.mrf.mxu3 }
  0xd1   :  { %v359_v39 = vpop.f32.mrf.mxu0  ;;  %v399_v5 = vpop.f32.mrf.mxu1 }
  0xd2   :  { %1474 = vst [vmem:[#allocation2 + $0x88] sm:$0xff] %v1386_v27   ;;  %v894_v42 = vmul.f32 %v1851_v35, %v359_v39  ;;  %v910_v43 = vmul.f32 %v1926_v20, %v399_v5 }
  0xd3   :  { %1473 = vst [vmem:[#allocation2 + $0x80] sm:$0xff] %v1381_v28  }
  0xd4   :  { %v1967_v7 = vpop.permute.xlu2 %805 }
  0xd5   :  { %v756_v21 = vpop.permute.xlu1 %755  ;;  %v751_v33 = vpop.permute.xlu0 %750 }
  0xd6   :  { %v925_v36 = vmul.f32 %v756_v21, %v436_v61  ;;  %v924_v37 = vmul.f32 %v751_v33, %v434_v24 }
  0xd8   :  { %v1391_v3 = vpack.c.bf16 %v925_v36, %v924_v37  ;;  %v439_v16 = vpop.f32.mrf.mxu2  ;;  %v1959_v25 = vpop.f32.mrf.mxu3 }
  0xd9   :  { %v361_v22 = vpop.f32.mrf.mxu0  ;;  %v401_v30 = vpop.f32.mrf.mxu1  ;;  %v926_v63 = vmul.f32 %v761_v54, %v439_v16 }
  0xda   :  { %1475 = vst [vmem:[#allocation2 + $0x90] sm:$0xff] %v1391_v3   ;;  %v895_v44 = vmul.f32 %v1849_v34, %v361_v22  ;;  %v911_v47 = vmul.f32 %v1889_v49, %v401_v30 }
  0xdc   :  { %v1316_v52 = vpack.c.bf16 %v895_v44, %v894_v42  ;;  %v1356_v53 = vpack.c.bf16 %v911_v47, %v910_v43  ;;  %v821_v27 = vpop.permute.xlu2 %820 }
  0xdd   :  { %v771_v24 = vpop.permute.xlu1 %770  ;;  %v766_v59 = vpop.permute.xlu0 %765 }
  0xde   :  { %1460 = vst [vmem:[#allocation2 + $0x18] sm:$0xff] %v1316_v52  }
  0xdf   :  { %1468 = vst [vmem:[#allocation2 + $0x58] sm:$0xff] %v1356_v53  }
  0xe0   :  { %v441_v60 = vpop.f32.mrf.mxu2  ;;  %v1965_v62 = vpop.f32.mrf.mxu3 }
  0xe1   :  { %v927_v1 = vmul.f32 %v766_v59, %v441_v60  ;;  %v364_v2 = vpop.f32.mrf.mxu0  ;;  %v404_v35 = vpop.f32.mrf.mxu1 }
  0xe2   :  { %v896_v13 = vmul.f32 %v1784_v9, %v364_v2  ;;  %v912_v14 = vmul.f32 %v1932_v19, %v404_v35 }
  0xe3   :  { %v1396_v20 = vpack.c.bf16 %v927_v1, %v926_v63 }
  0xe4   :  { %v836_v30 = vpop.permute.xlu2 %835 }
  0xe5   :  { %1476 = vst [vmem:[#allocation2 + $0x98] sm:$0xff] %v1396_v20   ;;  %v786_v34 = vpop.permute.xlu1 %785  ;;  %v781_v8 = vpop.permute.xlu0 %780  ;;  %v941_v2 = vmul.f32 %v836_v30, %v1955_v32 }
  0xe8   :  { %v444_v49 = vpop.f32.mrf.mxu2  ;;  %v1969_v10 = vpop.f32.mrf.mxu3 }
  0xe9   :  { %v366_v11 = vpop.f32.mrf.mxu0  ;;  %v406_v12 = vpop.f32.mrf.mxu1  ;;  %v928_v36 = vmul.f32 %v771_v24, %v444_v49 }
  0xea   :  { %v897_v54 = vmul.f32 %v1866_v41, %v366_v11  ;;  %v913_v15 = vmul.f32 %v1930_v29, %v406_v12 }
  0xec   :  { %v1321_v28 = vpack.c.bf16 %v897_v54, %v896_v13  ;;  %v1361_v61 = vpack.c.bf16 %v913_v15, %v912_v14  ;;  %v851_v14 = vpop.permute.xlu2 %850 }
  0xed   :  { %v1975_v39 = vpop.permute.xlu1 %800  ;;  %v1977_v5 = vpop.permute.xlu0 %795 }
  0xee   :  { %1461 = vst [vmem:[#allocation2 + $0x20] sm:$0xff] %v1321_v28  }
  0xef   :  { %1469 = vst [vmem:[#allocation2 + $0x60] sm:$0xff] %v1361_v61  }
  0xf0   :  { %v446_v21 = vpop.f32.mrf.mxu2  ;;  %v1979_v33 = vpop.f32.mrf.mxu3 }
  0xf1   :  { %v929_v9 = vmul.f32 %v1953_v6, %v446_v21  ;;  %v369_v19 = vpop.f32.mrf.mxu0  ;;  %v409_v37 = vpop.f32.mrf.mxu1 }
  0xf2   :  { %v898_v53 = vmul.f32 %v1864_v40, %v369_v19  ;;  %v914_v6 = vmul.f32 %v1904_v55, %v409_v37 }
  0xf3   :  { %v1401_v41 = vpack.c.bf16 %v929_v9, %v928_v36 }
  0xf4   :  { %v866_v19 = vpop.permute.xlu2 %865 }
  0xf5   :  { %1477 = vst [vmem:[#allocation2 + $0xa0] sm:$0xff] %v1401_v41   ;;  %v816_v29 = vpop.permute.xlu1 %815  ;;  %v811_v3 = vpop.permute.xlu0 %810 }
  0xf6   :  { %v937_v16 = vmul.f32 %v816_v29, %v1928_v26  ;;  %v936_v22 = vmul.f32 %v811_v3, %v1919_v4  ;;  %v938_v4 = vmul.f32 %v821_v27, %v1934_v31 }
  0xf8   :  { %v1421_v42 = vpack.c.bf16 %v937_v16, %v936_v22  ;;  %v449_v43 = vpop.f32.mrf.mxu2  ;;  %v489_v44 = vpop.f32.mrf.mxu3 }
  0xf9   :  { %v371_v47 = vpop.f32.mrf.mxu0  ;;  %v411_v52 = vpop.f32.mrf.mxu1  ;;  %v930_v11 = vmul.f32 %v781_v8, %v449_v43 }
  0xfa   :  { %1481 = vst [vmem:[#allocation2 + $0xc0] sm:$0xff] %v1421_v42   ;;  %v899_v24 = vmul.f32 %v1807_v17, %v371_v47  ;;  %v915_v59 = vmul.f32 %v1940_v46, %v411_v52 }
  0xfc   :  { %v1326_v60 = vpack.c.bf16 %v899_v24, %v898_v53  ;;  %v1366_v63 = vpack.c.bf16 %v915_v59, %v914_v6 }
  0xfd   :  { %v831_v26 = vpop.permute.xlu1 %830  ;;  %v826_v1 = vpop.permute.xlu0 %825 }
  0xfe   :  { %1462 = vst [vmem:[#allocation2 + $0x28] sm:$0xff] %v1326_v60   ;;  %v940_v35 = vmul.f32 %v831_v26, %v1948_v58  ;;  %v939_v40 = vmul.f32 %v826_v1, %v1942_v48 }
  0xff   :  { %1470 = vst [vmem:[#allocation2 + $0x68] sm:$0xff] %v1366_v63  }
 0x100   :  { %v1431_v55 = vpack.c.bf16 %v941_v2, %v940_v35  ;;  %v1426_v20 = vpack.c.bf16 %v939_v40, %v938_v4  ;;  %v451_v49 = vpop.f32.mrf.mxu2  ;;  %v491_v17 = vpop.f32.mrf.mxu3 }
 0x101   :  { %v931_v46 = vmul.f32 %v786_v34, %v451_v49  ;;  %v374_v12 = vpop.f32.mrf.mxu0  ;;  %v414_v13 = vpop.f32.mrf.mxu1  ;;  %v947_v3 = vmul.f32 %v866_v19, %v491_v17 }
 0x102   :  { %1483 = vst [vmem:[#allocation2 + $0xd0] sm:$0xff] %v1431_v55   ;;  %v900_v34 = vmul.f32 %v1893_v51, %v374_v12  ;;  %v916_v8 = vmul.f32 %v1938_v45, %v414_v13  ;;  %v881_v40 = vpop.permute.xlu2 %880 }
 0x103   :  { %1482 = vst [vmem:[#allocation2 + $0xc8] sm:$0xff] %v1426_v20   ;;  %v1406_v31 = vpack.c.bf16 %v931_v46, %v930_v11 }
 0x105   :  { %1478 = vst [vmem:[#allocation2 + $0xa8] sm:$0xff] %v1406_v31   ;;  %v846_v32 = vpop.permute.xlu1 %845  ;;  %v841_v54 = vpop.permute.xlu0 %840 }
 0x106   :  { %v943_v58 = vmul.f32 %v846_v32, %v1965_v62  ;;  %v942_v48 = vmul.f32 %v841_v54, %v1959_v25  ;;  %v944_v25 = vmul.f32 %v851_v14, %v1969_v10 }
 0x108   :  { %v1436_v15 = vpack.c.bf16 %v943_v58, %v942_v48  ;;  %v454_v27 = vpop.f32.mrf.mxu2  ;;  %v494_v28 = vpop.f32.mrf.mxu3 }
 0x109   :  { %v376_v61 = vpop.f32.mrf.mxu0  ;;  %v416_v21 = vpop.f32.mrf.mxu1 }
 0x10a   :  { %1484 = vst [vmem:[#allocation2 + $0xd8] sm:$0xff] %v1436_v15   ;;  %v901_v36 = vmul.f32 %v1891_v50, %v376_v61  ;;  %v917_v9 = vmul.f32 %v1917_v0, %v416_v21  ;;  %v932_v50 = vmul.f32 %v1957_v38, %v454_v27 }
 0x10c   :  { %v1331_v37 = vpack.c.bf16 %v901_v36, %v900_v34  ;;  %v1371_v41 = vpack.c.bf16 %v917_v9, %v916_v8 }
 0x10d   :  { %v861_v62 = vpop.permute.xlu1 %860  ;;  %v856_v29 = vpop.permute.xlu0 %855 }
 0x10e   :  { %1463 = vst [vmem:[#allocation2 + $0x30] sm:$0xff] %v1331_v37   ;;  %v946_v16 = vmul.f32 %v861_v62, %v489_v44  ;;  %v945_v22 = vmul.f32 %v856_v29, %v1979_v33 }
 0x10f   :  { %1471 = vst [vmem:[#allocation2 + $0x70] sm:$0xff] %v1371_v41  }
 0x110   :  { %v1446_v51 = vpack.c.bf16 %v947_v3, %v946_v16  ;;  %v1441_v45 = vpack.c.bf16 %v945_v22, %v944_v25  ;;  %v456_v30 = vpop.f32.mrf.mxu2  ;;  %v496_v42 = vpop.f32.mrf.mxu3 }
 0x111   :  { %v933_v0 = vmul.f32 %v1977_v5, %v456_v30  ;;  %v379_v43 = vpop.f32.mrf.mxu0  ;;  %v419_v47 = vpop.f32.mrf.mxu1 }
 0x112   :  { %1486 = vst [vmem:[#allocation2 + $0xe8] sm:$0xff] %v1446_v51   ;;  %v902_v26 = vmul.f32 %v1822_v23, %v379_v43  ;;  %v918_v38 = vmul.f32 %v1946_v18, %v419_v47 }
 0x113   :  { %1485 = vst [vmem:[#allocation2 + $0xe0] sm:$0xff] %v1441_v45   ;;  %v1411_v52 = vpack.c.bf16 %v933_v0, %v932_v50 }
 0x115   :  { %1479 = vst [vmem:[#allocation2 + $0xb0] sm:$0xff] %v1411_v52   ;;  %v876_v10 = vpop.permute.xlu1 %875  ;;  %v871_v53 = vpop.permute.xlu0 %870 }
 0x116   :  { %v949_v44 = vmul.f32 %v876_v10, %v496_v42  ;;  %v948_v6 = vmul.f32 %v871_v53, %v494_v28 }
 0x118   :  { %v1451_v33 = vpack.c.bf16 %v949_v44, %v948_v6  ;;  %v459_v24 = vpop.f32.mrf.mxu2  ;;  %v499_v59 = vpop.f32.mrf.mxu3 }
 0x119   :  { %v381_v60 = vpop.f32.mrf.mxu0  ;;  %v421_v63 = vpop.f32.mrf.mxu1  ;;  %v934_v23 = vmul.f32 %v1975_v39, %v459_v24  ;;  %v950_v18 = vmul.f32 %v881_v40, %v499_v59 }
 0x11a   :  { %1487 = vst [vmem:[#allocation2 + $0xf0] sm:$0xff] %v1451_v33   ;;  %v903_v5 = vmul.f32 %v1906_v57, %v381_v60  ;;  %v919_v1 = vmul.f32 %v1944_v56, %v421_v63 }
 0x11c   :  { %v1336_v4 = vpack.c.bf16 %v903_v5, %v902_v26  ;;  %v1376_v2 = vpack.c.bf16 %v919_v1, %v918_v38 }
 0x11d   :  { %v886_v35 = vpop.permute.xlu0 %885 }
 0x11e   :  { %1464 = vst [vmem:[#allocation2 + $0x38] sm:$0xff] %v1336_v4  }
 0x11f   :  { %1472 = vst [vmem:[#allocation2 + $0x78] sm:$0xff] %v1376_v2  }
 0x120   :  { %v461_v55 = vpop.f32.mrf.mxu2  ;;  %v501_v20 = vpop.f32.mrf.mxu3 }
 0x121   :  { %v935_v57 = vmul.f32 %v1967_v7, %v461_v55  ;;  %v951_v56 = vmul.f32 %v886_v35, %v501_v20 }
 0x123   :  { %v1416_v49 = vpack.c.bf16 %v935_v57, %v934_v23  ;;  %v1456_v17 = vpack.c.bf16 %v951_v56, %v950_v18 }
 0x125   :  { %1480 = vst [vmem:[#allocation2 + $0xb8] sm:$0xff] %v1416_v49  }
 0x126   :  { %1488 = vst [vmem:[#allocation2 + $0xf8] sm:$0xff] %v1456_v17  }
 0x127   :  { %1092 = dma.vmem_to_hbm [thread:$0]  %s1085_s24, 4096, %s1087_s27, [#allocation3], %s1548_s28, %s1548_s28, %s1549_s29  }
 0x128   :  { %1544 = dma.done.wait [#allocation3], 4096  }
 0x129   :  { %1545 = vsyncadd [#allocation3], 4294963200 }
 0x12a   :  { %1097 = vsyncpa [#allocation3], 1 }

</bundles_post_ra>
